<compile_context>
chip_gen: v7x
topology: tpu7x:2x2x1
jax: 0.10.0
libtpu: 0.0.40
codegen_flags: <defaults>
</compile_context>

<pallas_src>
import functools

import jax
import jax.numpy as jnp
from jax import lax
from jax.experimental import pallas as pl
from jax.experimental.pallas import tpu as pltpu

SELU_ALPHA = 1.6732632423543772848170429916717
SELU_LAMBDA = 1.0507009873554804934193349852946
BN_EPS = 1e-5


def _round_up(x, m):
    return (x + m - 1) // m * m


def _dense_block_kernel(x_ref, w_ref, b_ref, o_ref, scr_ref):
    """Whole DenseBlock for a block of batch elements (channels-last layout).

    x_ref   : (Bn, L, C0)                input tile (NLC)
    w_ref   : (num_layers, 3*C_pad, G)   BN-folded, tap-fused conv weights
    b_ref   : (num_layers, 1, G)         BN-folded biases (f32)
    o_ref   : (Bn, L, C_pad)             lane-dense padded output slab
    scr_ref : (8 + Bn*Lp8, 3*C_pad) f32  activation scratch; column block t
                                         holds the tap-t shifted activation.
    """
    bn, seq, c0 = x_ref.shape
    num_layers, _, G = b_ref.shape
    M, c3 = scr_ref.shape
    c_pad = c3 // 3
    lp8 = (M - 8) // bn                      # per-element row stride (8-aligned)

    # Fresh zero halos / zero padded channels every step.  The scratch persists
    # across grid steps and across megacore shards, so do not rely on a
    # program_id==0-only init.
    scr_ref[...] = jnp.zeros_like(scr_ref)

    # Scatter the input into the three tap blocks, rows shifted +1/0/-1 so that
    # scratch row r holds [x[r-1] | x[r] | x[r+1]].  Conv zero-padding at the
    # sequence (and batch-element) boundaries is simply the untouched zero rows.
    for b in range(bn):
        r0 = 8 + b * lp8
        xb = x_ref[b].astype(jnp.float32)                     # (seq, c0)
        for t in range(3):
            rt = r0 + 1 - t
            scr_ref[rt:rt + seq, t * c_pad:t * c_pad + c0] = xb

    for i in range(num_layers):              # static unroll; layers are sequential
        # Fixed-shape fused 3-tap conv: ONE (M, 3*C_pad) @ (3*C_pad, G) matmul.
        lhs = scr_ref[...].astype(w_ref.dtype)                # bf16 on v6e/v7x
        y = jnp.dot(lhs, w_ref[i], preferred_element_type=jnp.float32)  # (M, G) f32
        y = y + b_ref[i]                                      # conv bias + folded BN
        # SELU (overflow-safe: exp only ever sees y <= 0).  Dropout = identity.
        y = SELU_LAMBDA * (jnp.maximum(y, 0.0)
                           + SELU_ALPHA * (jnp.exp(jnp.minimum(y, 0.0)) - 1.0))

        # Grow channels in place: store only the real sequence rows (halo rows
        # stay exactly zero) into this layer's column slice of all three blocks.
        c = c0 + i * G
        for b in range(bn):
            r0 = 8 + b * lp8
            yb = y[r0:r0 + seq, :]                            # aligned value slice
            for t in range(3):
                rt = r0 + 1 - t
                scr_ref[rt:rt + seq, t * c_pad + c:t * c_pad + c + G] = yb

    # Lane-dense store of the (padded) channels-last output slab.  Block t=1 of
    # the scratch holds the unshifted activation = concat([x, y_0, ..., y_last]).
    for b in range(bn):
        r0 = 8 + b * lp8
        o_ref[b] = scr_ref[r0:r0 + seq, c_pad:2 * c_pad].astype(o_ref.dtype)


def dense_block_forward_pallas(x_ncl, params, *, compute_dtype=jnp.bfloat16):
    """Fused Pallas DenseBlock forward. x_ncl: (N, C, L) in PyTorch layout."""
    N, c0, L = x_ncl.shape
    num_layers = len(params)
    G = params[0]["w_pt"].shape[0]
    c_tot = c0 + num_layers * G
    c_pad = _round_up(c_tot, 128)            # lane-dense activation/output width
    lp8 = _round_up(L + 1, 8)                # rows per element in scratch (>= L+1)

    # Fold eval-mode BatchNorm into the conv weights/bias (host side, once) and
    # pack every layer's 3 taps into one (3*C_pad, G) matrix whose rows match
    # the scratch's tap-block column layout; missing channels are zero rows.
    w_all = jnp.zeros((num_layers, 3 * c_pad, G), jnp.float32)
    b_all = jnp.zeros((num_layers, 1, G), jnp.float32)
    for i, p in enumerate(params):
        cin = c0 + i * G
        scale = p["gamma"] / jnp.sqrt(p["run_var"] + BN_EPS)
        w_kco = jnp.transpose(p["w_pt"], (2, 1, 0)) * scale[None, None, :]  # (3,cin,G)
        w_l = jnp.zeros((3, c_pad, G), jnp.float32).at[:, :cin, :].set(
            w_kco.astype(jnp.float32))
        w_all = w_all.at[i].set(w_l.reshape(3 * c_pad, G))
        b_all = b_all.at[i, 0, :].set((p["bias"] - p["run_mean"]) * scale + p["beta"])
    w_all = w_all.astype(compute_dtype)      # bf16 MXU operands on v6e/v7x

    # Batch block size: biggest divisor of N under a modest VMEM budget while
    # keeping >=2 grid steps (so the 'parallel' axis can feed both v7x cores).
    bytes_per_elem = 4 * (lp8 * 3 * c_pad + 2 * L * c0 + 2 * L * c_pad)
    bn = 1
    for cand in range(1, N + 1):
        if N % cand:
            continue
        if cand * bytes_per_elem > (8 << 20):
            break
        if N // cand >= 2 or N == 1:
            bn = cand
    m_rows = 8 + bn * lp8

    # NCL -> NLC so channels sit on lanes (small tensor; see TODO above).
    x_nlc = jnp.transpose(x_ncl, (0, 2, 1))

    out_pad = pl.pallas_call(
        _dense_block_kernel,
        out_shape=jax.ShapeDtypeStruct((N, L, c_pad), x_ncl.dtype),
        grid=(N // bn,),
        in_specs=[
            pl.BlockSpec((bn, L, c0), lambda n: (n, 0, 0)),
            pl.BlockSpec((num_layers, 3 * c_pad, G), lambda n: (0, 0, 0)),
            pl.BlockSpec((num_layers, 1, G), lambda n: (0, 0, 0)),
        ],
        out_specs=pl.BlockSpec((bn, L, c_pad), lambda n: (n, 0, 0)),
        scratch_shapes=[pltpu.VMEM((m_rows, 3 * c_pad), jnp.float32)],
        compiler_params=pltpu.CompilerParams(
            dimension_semantics=("parallel",),
            vmem_limit_bytes=32 * 1024 * 1024),
    )(x_nlc, w_all, b_all)

    # Strip channel padding, return PyTorch NCL layout.
    return jnp.transpose(out_pad[:, :, :c_tot], (0, 2, 1))


def make_dense_block_params(key, in_channels, growth_rate, num_layers):
    """Deterministic parameter init mirroring the torch module's shapes."""
    params = []
    for i in range(num_layers):
        cin = in_channels + i * growth_rate
        cout = growth_rate
        key, kw, kb, kg, kbe, km, kv = jax.random.split(key, 7)
        w_pt = jax.random.normal(kw, (cout, cin, 3), jnp.float32) * 0.2  # torch (O,I,K)
        bias = jax.random.normal(kb, (cout,), jnp.float32) * 0.1
        gamma = 1.0 + 0.1 * jax.random.normal(kg, (cout,), jnp.float32)
        beta = 0.1 * jax.random.normal(kbe, (cout,), jnp.float32)
        run_mean = 0.1 * jax.random.normal(km, (cout,), jnp.float32)
        run_var = 0.5 + jax.random.uniform(kv, (cout,), jnp.float32)
        params.append(dict(w_pt=w_pt, bias=bias, gamma=gamma, beta=beta,
                           run_mean=run_mean, run_var=run_var))
    return params


def dense_block_forward_ref(x_ncl, params):
    """Pure-JAX reference using lax.conv (PyTorch NCL semantics, eval mode)."""
    x = x_ncl
    for p in params:
        y = lax.conv_general_dilated(
            x, p["w_pt"], window_strides=(1,), padding=((1, 1),),
            dimension_numbers=("NCH", "OIH", "NCH"))
        y = y + p["bias"][None, :, None]
        y = (y - p["run_mean"][None, :, None]) / jnp.sqrt(
            p["run_var"][None, :, None] + BN_EPS)
        y = y * p["gamma"][None, :, None] + p["beta"][None, :, None]
        y = SELU_LAMBDA * jnp.where(y > 0, y, SELU_ALPHA * (jnp.exp(y) - 1.0))
        x = jnp.concatenate([x, y], axis=1)
    return x


if __name__ == "__main__":
    N, in_channels, growth_rate, num_layers, L = 2, 4, 4, 3, 16

    key = jax.random.PRNGKey(0)
    kx, kp = jax.random.split(key)
    x = jax.random.normal(kx, (N, in_channels, L), jnp.float32)  # PyTorch NCL
    params = make_dense_block_params(kp, in_channels, growth_rate, num_layers)

    ref = dense_block_forward_ref(x, params)
    c_out = in_channels + num_layers * growth_rate

    # f32 MXU operands: tight check of the fused/scratch-based kernel structure.
    fwd_f32 = jax.jit(functools.partial(dense_block_forward_pallas,
                                        compute_dtype=jnp.float32))
    out_f32 = jax.block_until_ready(fwd_f32(x, params))
    assert out_f32.shape == (N, c_out, L), out_f32.shape
    assert jnp.allclose(out_f32, ref, rtol=1e-4, atol=1e-4), (
        float(jnp.max(jnp.abs(out_f32 - ref))))

    # bf16 MXU operands (default fast path on v6e/v7x): looser tolerance.
    fwd_bf16 = jax.jit(dense_block_forward_pallas)
    out_bf16 = jax.block_until_ready(fwd_bf16(x, params))
    assert out_bf16.shape == (N, c_out, L), out_bf16.shape
    assert jnp.allclose(out_bf16, ref, rtol=1e-1, atol=1e-1), (
        float(jnp.max(jnp.abs(out_bf16 - ref))))

    print("KERNEL_OK")
</pallas_src>

<mosaic_0001>
module attributes {stable_mosaic.version = 11 : i64} {
  func.func @_dense_block_kernel(%arg0: i32, %arg1: memref<1x16x4xf32, #tpu.memory_space<vmem>>, %arg2: memref<3x384x4xf32, #tpu.memory_space<vmem>>, %arg3: memref<3x1x4xf32, #tpu.memory_space<vmem>>, %arg4: memref<1x16x128xf32, #tpu.memory_space<vmem>>, %arg5: memref<32x384xf32, #tpu.memory_space<vmem>>) attributes {dimension_semantics = [#tpu.dimension_semantics<parallel>], iteration_bounds = array<i64: 2>, scalar_prefetch = 0 : i64, scratch_operands = 1 : i64, tpu.core_type = #tpu.core_type<tc>, window_params = [{transform_indices = @transform_0, window_bounds = array<i64: 1, 16, 4>}, {pipeline_mode = #tpu.pipeline_mode<synchronous>, transform_indices = @transform_1, window_bounds = array<i64: 3, 384, 4>}, {pipeline_mode = #tpu.pipeline_mode<synchronous>, transform_indices = @transform_2, window_bounds = array<i64: 3, 1, 4>}, {transform_indices = @transform_3, window_bounds = array<i64: 1, 16, 128>}]} {
    %cst = arith.constant 0.000000e+00 : f32
    %0 = vector.broadcast %cst : f32 to vector<32x384xf32>
    %c0 = arith.constant 0 : index
    %c0_0 = arith.constant 0 : index
    %1 = vector.load %arg5[%c0, %c0_0] : memref<32x384xf32, #tpu.memory_space<vmem>>, vector<32x384xf32>
    tpu.vector_store %arg5[%c0, %c0_0], %0 {strides = array<i32>} : memref<32x384xf32, #tpu.memory_space<vmem>>, vector<32x384xf32>,
    %c0_1 = arith.constant 0 : index
    %c0_2 = arith.constant 0 : index
    %c0_3 = arith.constant 0 : index
    %2 = vector.load %arg1[%c0_1, %c0_2, %c0_3] : memref<1x16x4xf32, #tpu.memory_space<vmem>>, vector<1x16x4xf32>
    %3 = vector.shape_cast %2 : vector<1x16x4xf32> to vector<16x4xf32>
    %c9 = arith.constant 9 : index
    %c0_4 = arith.constant 0 : index
    %4 = vector.load %arg5[%c9, %c0_4] : memref<32x384xf32, #tpu.memory_space<vmem>>, vector<16x4xf32>
    tpu.vector_store %arg5[%c9, %c0_4], %3 {strides = array<i32>} : memref<32x384xf32, #tpu.memory_space<vmem>>, vector<16x4xf32>,
    %c8 = arith.constant 8 : index
    %c128 = arith.constant 128 : index
    %5 = vector.load %arg5[%c8, %c128] : memref<32x384xf32, #tpu.memory_space<vmem>>, vector<16x4xf32>
    tpu.vector_store %arg5[%c8, %c128], %3 {strides = array<i32>} : memref<32x384xf32, #tpu.memory_space<vmem>>, vector<16x4xf32>,
    %c7 = arith.constant 7 : index
    %c256 = arith.constant 256 : index
    %6 = vector.load %arg5[%c7, %c256] : memref<32x384xf32, #tpu.memory_space<vmem>>, vector<16x4xf32>
    tpu.vector_store %arg5[%c7, %c256], %3 {strides = array<i32>} : memref<32x384xf32, #tpu.memory_space<vmem>>, vector<16x4xf32>,
    %c0_5 = arith.constant 0 : index
    %c0_6 = arith.constant 0 : index
    %7 = vector.load %arg5[%c0_5, %c0_6] : memref<32x384xf32, #tpu.memory_space<vmem>>, vector<32x384xf32>
    %c0_7 = arith.constant 0 : index
    %c0_8 = arith.constant 0 : index
    %c0_9 = arith.constant 0 : index
    %8 = vector.load %arg2[%c0_7, %c0_8, %c0_9] : memref<3x384x4xf32, #tpu.memory_space<vmem>>, vector<1x384x4xf32>
    %9 = vector.shape_cast %8 : vector<1x384x4xf32> to vector<384x4xf32>
    %cst_10 = arith.constant dense<0.000000e+00> : vector<32x4xf32>
    %10 = tpu.matmul %7, %9, %cst_10 {dimension_numbers = #tpu.dot_dimension_numbers<[1], [0], [0], [1], [0, 0, 1, 1], [], []>} : vector<32x384xf32>, vector<384x4xf32>, vector<32x4xf32> -> vector<32x4xf32>
    %c0_11 = arith.constant 0 : index
    %c0_12 = arith.constant 0 : index
    %c0_13 = arith.constant 0 : index
    %11 = vector.load %arg3[%c0_11, %c0_12, %c0_13] : memref<3x1x4xf32, #tpu.memory_space<vmem>>, vector<1x1x4xf32>
    %12 = vector.shape_cast %11 : vector<1x1x4xf32> to vector<1x4xf32>
    %13 = vector.broadcast %12 : vector<1x4xf32> to vector<32x4xf32>
    %14 = arith.addf %10, %13 : vector<32x4xf32>
    %cst_14 = arith.constant 0.000000e+00 : f32
    %15 = vector.broadcast %cst_14 : f32 to vector<32x4xf32>
    %16 = arith.maximumf %14, %15 : vector<32x4xf32>
    %cst_15 = arith.constant 0.000000e+00 : f32
    %17 = vector.broadcast %cst_15 : f32 to vector<32x4xf32>
    %18 = arith.minimumf %14, %17 : vector<32x4xf32>
    %19 = math.exp %18 : vector<32x4xf32>
    %cst_16 = arith.constant 1.000000e+00 : f32
    %20 = vector.broadcast %cst_16 : f32 to vector<32x4xf32>
    %21 = arith.subf %19, %20 : vector<32x4xf32>
    %cst_17 = arith.constant 1.67326319 : f32
    %22 = vector.broadcast %cst_17 : f32 to vector<32x4xf32>
    %23 = arith.mulf %22, %21 : vector<32x4xf32>
    %24 = arith.addf %16, %23 : vector<32x4xf32>
    %cst_18 = arith.constant 1.05070102 : f32
    %25 = vector.broadcast %cst_18 : f32 to vector<32x4xf32>
    %26 = arith.mulf %25, %24 : vector<32x4xf32>
    %27 = vector.extract_strided_slice %26 {offsets = [8, 0], sizes = [16, 4], strides = [1, 1]} : vector<32x4xf32> to vector<16x4xf32>
    %c9_19 = arith.constant 9 : index
    %c4 = arith.constant 4 : index
    %28 = vector.load %arg5[%c9_19, %c4] : memref<32x384xf32, #tpu.memory_space<vmem>>, vector<16x4xf32>
    tpu.vector_store %arg5[%c9_19, %c4], %27 {strides = array<i32>} : memref<32x384xf32, #tpu.memory_space<vmem>>, vector<16x4xf32>,
    %c8_20 = arith.constant 8 : index
    %c132 = arith.constant 132 : index
    %29 = vector.load %arg5[%c8_20, %c132] : memref<32x384xf32, #tpu.memory_space<vmem>>, vector<16x4xf32>
    tpu.vector_store %arg5[%c8_20, %c132], %27 {strides = array<i32>} : memref<32x384xf32, #tpu.memory_space<vmem>>, vector<16x4xf32>,
    %c7_21 = arith.constant 7 : index
    %c260 = arith.constant 260 : index
    %30 = vector.load %arg5[%c7_21, %c260] : memref<32x384xf32, #tpu.memory_space<vmem>>, vector<16x4xf32>
    tpu.vector_store %arg5[%c7_21, %c260], %27 {strides = array<i32>} : memref<32x384xf32, #tpu.memory_space<vmem>>, vector<16x4xf32>,
    %c0_22 = arith.constant 0 : index
    %c0_23 = arith.constant 0 : index
    %31 = vector.load %arg5[%c0_22, %c0_23] : memref<32x384xf32, #tpu.memory_space<vmem>>, vector<32x384xf32>
    %c1 = arith.constant 1 : index
    %c0_24 = arith.constant 0 : index
    %c0_25 = arith.constant 0 : index
    %32 = vector.load %arg2[%c1, %c0_24, %c0_25] : memref<3x384x4xf32, #tpu.memory_space<vmem>>, vector<1x384x4xf32>
    %33 = vector.shape_cast %32 : vector<1x384x4xf32> to vector<384x4xf32>
    %cst_26 = arith.constant dense<0.000000e+00> : vector<32x4xf32>
    %34 = tpu.matmul %31, %33, %cst_26 {dimension_numbers = #tpu.dot_dimension_numbers<[1], [0], [0], [1], [0, 0, 1, 1], [], []>} : vector<32x384xf32>, vector<384x4xf32>, vector<32x4xf32> -> vector<32x4xf32>
    %c1_27 = arith.constant 1 : index
    %c0_28 = arith.constant 0 : index
    %c0_29 = arith.constant 0 : index
    %35 = vector.load %arg3[%c1_27, %c0_28, %c0_29] : memref<3x1x4xf32, #tpu.memory_space<vmem>>, vector<1x1x4xf32>
    %36 = vector.shape_cast %35 : vector<1x1x4xf32> to vector<1x4xf32>
    %37 = vector.broadcast %36 : vector<1x4xf32> to vector<32x4xf32>
    %38 = arith.addf %34, %37 : vector<32x4xf32>
    %cst_30 = arith.constant 0.000000e+00 : f32
    %39 = vector.broadcast %cst_30 : f32 to vector<32x4xf32>
    %40 = arith.maximumf %38, %39 : vector<32x4xf32>
    %cst_31 = arith.constant 0.000000e+00 : f32
    %41 = vector.broadcast %cst_31 : f32 to vector<32x4xf32>
    %42 = arith.minimumf %38, %41 : vector<32x4xf32>
    %43 = math.exp %42 : vector<32x4xf32>
    %cst_32 = arith.constant 1.000000e+00 : f32
    %44 = vector.broadcast %cst_32 : f32 to vector<32x4xf32>
    %45 = arith.subf %43, %44 : vector<32x4xf32>
    %cst_33 = arith.constant 1.67326319 : f32
    %46 = vector.broadcast %cst_33 : f32 to vector<32x4xf32>
    %47 = arith.mulf %46, %45 : vector<32x4xf32>
    %48 = arith.addf %40, %47 : vector<32x4xf32>
    %cst_34 = arith.constant 1.05070102 : f32
    %49 = vector.broadcast %cst_34 : f32 to vector<32x4xf32>
    %50 = arith.mulf %49, %48 : vector<32x4xf32>
    %51 = vector.extract_strided_slice %50 {offsets = [8, 0], sizes = [16, 4], strides = [1, 1]} : vector<32x4xf32> to vector<16x4xf32>
    %c9_35 = arith.constant 9 : index
    %c8_36 = arith.constant 8 : index
    %52 = vector.load %arg5[%c9_35, %c8_36] : memref<32x384xf32, #tpu.memory_space<vmem>>, vector<16x4xf32>
    tpu.vector_store %arg5[%c9_35, %c8_36], %51 {strides = array<i32>} : memref<32x384xf32, #tpu.memory_space<vmem>>, vector<16x4xf32>,
    %c8_37 = arith.constant 8 : index
    %c136 = arith.constant 136 : index
    %53 = vector.load %arg5[%c8_37, %c136] : memref<32x384xf32, #tpu.memory_space<vmem>>, vector<16x4xf32>
    tpu.vector_store %arg5[%c8_37, %c136], %51 {strides = array<i32>} : memref<32x384xf32, #tpu.memory_space<vmem>>, vector<16x4xf32>,
    %c7_38 = arith.constant 7 : index
    %c264 = arith.constant 264 : index
    %54 = vector.load %arg5[%c7_38, %c264] : memref<32x384xf32, #tpu.memory_space<vmem>>, vector<16x4xf32>
    tpu.vector_store %arg5[%c7_38, %c264], %51 {strides = array<i32>} : memref<32x384xf32, #tpu.memory_space<vmem>>, vector<16x4xf32>,
    %c0_39 = arith.constant 0 : index
    %c0_40 = arith.constant 0 : index
    %55 = vector.load %arg5[%c0_39, %c0_40] : memref<32x384xf32, #tpu.memory_space<vmem>>, vector<32x384xf32>
    %c2 = arith.constant 2 : index
    %c0_41 = arith.constant 0 : index
    %c0_42 = arith.constant 0 : index
    %56 = vector.load %arg2[%c2, %c0_41, %c0_42] : memref<3x384x4xf32, #tpu.memory_space<vmem>>, vector<1x384x4xf32>
    %57 = vector.shape_cast %56 : vector<1x384x4xf32> to vector<384x4xf32>
    %cst_43 = arith.constant dense<0.000000e+00> : vector<32x4xf32>
    %58 = tpu.matmul %55, %57, %cst_43 {dimension_numbers = #tpu.dot_dimension_numbers<[1], [0], [0], [1], [0, 0, 1, 1], [], []>} : vector<32x384xf32>, vector<384x4xf32>, vector<32x4xf32> -> vector<32x4xf32>
    %c2_44 = arith.constant 2 : index
    %c0_45 = arith.constant 0 : index
    %c0_46 = arith.constant 0 : index
    %59 = vector.load %arg3[%c2_44, %c0_45, %c0_46] : memref<3x1x4xf32, #tpu.memory_space<vmem>>, vector<1x1x4xf32>
    %60 = vector.shape_cast %59 : vector<1x1x4xf32> to vector<1x4xf32>
    %61 = vector.broadcast %60 : vector<1x4xf32> to vector<32x4xf32>
    %62 = arith.addf %58, %61 : vector<32x4xf32>
    %cst_47 = arith.constant 0.000000e+00 : f32
    %63 = vector.broadcast %cst_47 : f32 to vector<32x4xf32>
    %64 = arith.maximumf %62, %63 : vector<32x4xf32>
    %cst_48 = arith.constant 0.000000e+00 : f32
    %65 = vector.broadcast %cst_48 : f32 to vector<32x4xf32>
    %66 = arith.minimumf %62, %65 : vector<32x4xf32>
    %67 = math.exp %66 : vector<32x4xf32>
    %cst_49 = arith.constant 1.000000e+00 : f32
    %68 = vector.broadcast %cst_49 : f32 to vector<32x4xf32>
    %69 = arith.subf %67, %68 : vector<32x4xf32>
    %cst_50 = arith.constant 1.67326319 : f32
    %70 = vector.broadcast %cst_50 : f32 to vector<32x4xf32>
    %71 = arith.mulf %70, %69 : vector<32x4xf32>
    %72 = arith.addf %64, %71 : vector<32x4xf32>
    %cst_51 = arith.constant 1.05070102 : f32
    %73 = vector.broadcast %cst_51 : f32 to vector<32x4xf32>
    %74 = arith.mulf %73, %72 : vector<32x4xf32>
    %75 = vector.extract_strided_slice %74 {offsets = [8, 0], sizes = [16, 4], strides = [1, 1]} : vector<32x4xf32> to vector<16x4xf32>
    %c9_52 = arith.constant 9 : index
    %c12 = arith.constant 12 : index
    %76 = vector.load %arg5[%c9_52, %c12] : memref<32x384xf32, #tpu.memory_space<vmem>>, vector<16x4xf32>
    tpu.vector_store %arg5[%c9_52, %c12], %75 {strides = array<i32>} : memref<32x384xf32, #tpu.memory_space<vmem>>, vector<16x4xf32>,
    %c8_53 = arith.constant 8 : index
    %c140 = arith.constant 140 : index
    %77 = vector.load %arg5[%c8_53, %c140] : memref<32x384xf32, #tpu.memory_space<vmem>>, vector<16x4xf32>
    tpu.vector_store %arg5[%c8_53, %c140], %75 {strides = array<i32>} : memref<32x384xf32, #tpu.memory_space<vmem>>, vector<16x4xf32>,
    %c7_54 = arith.constant 7 : index
    %c268 = arith.constant 268 : index
    %78 = vector.load %arg5[%c7_54, %c268] : memref<32x384xf32, #tpu.memory_space<vmem>>, vector<16x4xf32>
    tpu.vector_store %arg5[%c7_54, %c268], %75 {strides = array<i32>} : memref<32x384xf32, #tpu.memory_space<vmem>>, vector<16x4xf32>,
    %c8_55 = arith.constant 8 : index
    %c128_56 = arith.constant 128 : index
    %79 = vector.load %arg5[%c8_55, %c128_56] : memref<32x384xf32, #tpu.memory_space<vmem>>, vector<16x128xf32>
    %c0_57 = arith.constant 0 : index
    %c0_58 = arith.constant 0 : index
    %c0_59 = arith.constant 0 : index
    %80 = vector.load %arg4[%c0_57, %c0_58, %c0_59] : memref<1x16x128xf32, #tpu.memory_space<vmem>>, vector<1x16x128xf32>
    %81 = vector.shape_cast %80 : vector<1x16x128xf32> to vector<16x128xf32>
    %82 = vector.shape_cast %79 : vector<16x128xf32> to vector<1x16x128xf32>
    tpu.vector_store %arg4[%c0_57, %c0_58, %c0_59], %82 {strides = array<i32>} : memref<1x16x128xf32, #tpu.memory_space<vmem>>, vector<1x16x128xf32>,
    return
  }
  func.func @transform_0(%arg0: i32) -> (i32, i32, i32) {
    %c0_i32 = arith.constant 0 : i32
    %c0_i32_0 = arith.constant 0 : i32
    %c0_i32_1 = arith.constant 0 : i32
    return %arg0, %c0_i32, %c0_i32_0 : i32, i32, i32
  }
  func.func @transform_1(%arg0: i32) -> (i32, i32, i32) {
    %c0_i32 = arith.constant 0 : i32
    %c0_i32_0 = arith.constant 0 : i32
    %c0_i32_1 = arith.constant 0 : i32
    %c0_i32_2 = arith.constant 0 : i32
    return %c0_i32, %c0_i32_0, %c0_i32_1 : i32, i32, i32
  }
  func.func @transform_2(%arg0: i32) -> (i32, i32, i32) {
    %c0_i32 = arith.constant 0 : i32
    %c0_i32_0 = arith.constant 0 : i32
    %c0_i32_1 = arith.constant 0 : i32
    %c0_i32_2 = arith.constant 0 : i32
    return %c0_i32, %c0_i32_0, %c0_i32_1 : i32, i32, i32
  }
  func.func @transform_3(%arg0: i32) -> (i32, i32, i32) {
    %c0_i32 = arith.constant 0 : i32
    %c0_i32_0 = arith.constant 0 : i32
    %c0_i32_1 = arith.constant 0 : i32
    return %arg0, %c0_i32, %c0_i32_0 : i32, i32, i32
  }
}

</mosaic_0001>

<bundles_post_ra>
// kernel: dense_block_forward_pallas.1
= control target key start
LH: loop header
LB: loop body
LE: loop exit
PB: predicated region body
PF: predicated region fallthrough
CT: control target
= control target key end

     0   :  { %s1834_s12 = smov 0   ;;  %s2364_s0 = inlined_call_operand.vmem [shape: f32[2,16,4], index: 0, kind: input, shape index: {}]   ;;  %s2365_s1 = inlined_call_operand.vmem [shape: f32[3,384,4], index: 1, kind: input, shape index: {}]   ;;  %s2366_s2 = inlined_call_operand.vmem [shape: f32[3,1,4], index: 2, kind: input, shape index: {}]   ;;  %s2367_s3 = inlined_call_operand.vmem [shape: f32[2,16,128], index: 3, kind: output, shape index: {}]  }
   0x1 LB: > { %s1159_s13 = sadd.s32 4294967295, %s1808_s12   ;;  %p1163_p0 = scmp.ge.s32.totalorder %s1808_s12, 1  ;;  %s1808_s12 = sphi %s1834_s12, %s13_s12  }
   0x2   : > { %p137_p1 = scmp.lt.s32.totalorder %s1808_s12, 3 }
   0x4   : > { %p138_p2 = pnand %p1163_p0, %p137_p1 }
   0x5   : > { %v242_v0 = vld [vmem:[%s2365_s1 + $0x80] sm:$0xff] (!%p138_p2)  ;;  %v243_v1 = vld [vmem:[%s2365_s1 + $0x88] sm:$0xff] (!%p138_p2)  ;;  %v244_v5 = vld [vmem:[%s2365_s1 + $0x90] sm:$0xff] (!%p138_p2)  ;;  %v1810_v7 = vmov (!%p138_p2), 0.0   ;;  %p1872_p3 = scmp.lt.s32.totalorder (!%p138_p2), %s1159_s13, 1  ;;  %vm196_vm0 = vcmask (!%p138_p2), 31744  }
   0x6   : > { %141 = sbr.rel (%p138_p2) target bundleno = 1156 (0x484), region = 32  ;;  %v226_v2 = vld [vmem:[%s2365_s1] sm:$0xff] (!%p138_p2)  ;;  %v1585_v3 = vpack.c.bf16 (!%p138_p2), %v243_v1, %v242_v0  ;;  %v227_v4 = vld [vmem:[%s2365_s1 + $0x8] sm:$0xff] (!%p138_p2)  ;;  %v245_v6 = vld [vmem:[%s2365_s1 + $0x98] sm:$0xff] (!%p138_p2)  ;;  %172 = vst [vmem:[#allocation2 + $0x8] sm:$0xff] (!%p138_p2), %v1810_v7  ;;  %345 = vmatprep.mubr.f32.mxu0 (!%p138_p2), %v1810_v7  ;;  %vm194_vm1 = vcmask (!%p138_p2), 31745  }
   0x7   : > { %173 = vst [vmem:[#allocation2 + $0x10] sm:$0xff] (!%p138_p2), %v1810_v7  ;;  %174 = vst [vmem:[#allocation2 + $0x18] sm:$0xff] (!%p138_p2), %v1810_v7  ;;  %v1587_v8 = vpack.c.bf16 (!%p138_p2), %v227_v4, %v226_v2  ;;  %v1589_v9 = vpack.c.bf16 (!%p138_p2), %v245_v6, %v244_v5  ;;  %v228_v10 = vld [vmem:[%s2365_s1 + $0x10] sm:$0xff] (!%p138_p2)  ;;  %v229_v11 = vld [vmem:[%s2365_s1 + $0x18] sm:$0xff] (!%p138_p2)  ;;  %vm209_vm2 = vcmask (!%p138_p2), 31751   ;;  %vm187_vm3 = vcmask (!%p138_p2), 1040384  }
   0x8   : > { %175 = vst [vmem:[#allocation2 + $0x20] sm:$0xff] (!%p138_p2), %v1810_v7  ;;  %176 = vst [vmem:[#allocation2 + $0x28] sm:$0xff] (!%p138_p2), %v1810_v7  ;;  %v246_v12 = vld [vmem:[%s2365_s1 + $0xa0] sm:$0xff] (!%p138_p2)  ;;  %1586 = vmatprep.subr.bf16.mxu0 (!%p138_p2), %v1585_v3  ;;  %v247_v13 = vld [vmem:[%s2365_s1 + $0xa8] sm:$0xff] (!%p138_p2)  ;;  %v1591_v16 = vpack.c.bf16 (!%p138_p2), %v229_v11, %v228_v10  ;;  %vm202_vm4 = vcmask (!%p138_p2), 1046528   ;;  %vm212_vm5 = vcmask (!%p138_p2), 30720  }
   0x9   : > { %177 = vst [vmem:[#allocation2 + $0x30] sm:$0xff] (!%p138_p2), %v1810_v7  ;;  %178 = vst [vmem:[#allocation2 + $0x38] sm:$0xff] (!%p138_p2), %v1810_v7  ;;  %v258_v14 = vld [vmem:[%s2365_s1 + $0x100] sm:$0xff] (!%p138_p2)  ;;  %v259_v15 = vld [vmem:[%s2365_s1 + $0x108] sm:$0xff] (!%p138_p2)  ;;  %1588 = vmatpush3.bf16.msra.mxu0 (!%p138_p2), %v1587_v8  ;;  %v1593_v19 = vpack.c.bf16 (!%p138_p2), %v247_v13, %v246_v12  ;;  %vm198_vm6 = vcmask (!%p138_p2), 24576   ;;  %s1811_s19 = smov (!%p138_p2), 4  }
   0xa   : > { %179 = vst [vmem:[#allocation2 + $0x40] sm:$0xff] (!%p138_p2), %v1810_v7  ;;  %180 = vst [vmem:[#allocation2 + $0x48] sm:$0xff] (!%p138_p2), %v1810_v7  ;;  %v1617_v17 = vpack.c.bf16 (!%p138_p2), %v259_v15, %v258_v14  ;;  %v230_v18 = vld [vmem:[%s2365_s1 + $0x20] sm:$0xff] (!%p138_p2)  ;;  %1590 = vmatprep.subr.bf16.mxu0 (!%p138_p2), %v1589_v9  ;;  %v231_v20 = vld [vmem:[%s2365_s1 + $0x28] sm:$0xff] (!%p138_p2)  ;;  %vm479_vm7 = vcmask (!%p138_p2), 64544   ;;  %vm503_vm8 = vcmask (!%p138_p2), 64551  }
   0xb   : > { %v260_v21 = vld [vmem:[%s2365_s1 + $0x110] sm:$0xff] (!%p138_p2)  ;;  %v261_v22 = vld [vmem:[%s2365_s1 + $0x118] sm:$0xff] (!%p138_p2)  ;;  %v262_v26 = vld [vmem:[%s2365_s1 + $0x120] sm:$0xff] (!%p138_p2)  ;;  %v1595_v28 = vpack.c.bf16 (!%p138_p2), %v231_v20, %v230_v18  ;;  %vm477_vm9 = vcmask (!%p138_p2), 64545   ;;  %vm506_vm10 = vcmask (!%p138_p2), 63520   ;;  %vm481_vm11 = vcmask (!%p138_p2), 57376  }
   0xc   : > { %1618 = vmatprep.subr.bf16.mxu1 (!%p138_p2), %v1617_v17  ;;  %v248_v23 = vld [vmem:[%s2365_s1 + $0xb0] sm:$0xff] (!%p138_p2)  ;;  %v249_v24 = vld [vmem:[%s2365_s1 + $0xb8] sm:$0xff] (!%p138_p2)  ;;  %v1621_v25 = vpack.c.bf16 (!%p138_p2), %v261_v22, %v260_v21  ;;  %v263_v27 = vld [vmem:[%s2365_s1 + $0x128] sm:$0xff] (!%p138_p2)  ;;  %vm775_vm12 = vcmask (!%p138_p2), 97344   ;;  %vm773_vm13 = vcmask (!%p138_p2), 97345   ;;  %vm799_vm14 = vcmask (!%p138_p2), 97351  }
   0xd   : > { %s2370_s13 = smov (!%p1872_p3, %s1159_s13), 1  ;;  %1620 = vmatpush3.bf16.msra.mxu1 %v1617_v17  ;;  %1592 = vmatpush3.bf16.msra.mxu0 %v1591_v16  ;;  %v232_v29 = vld [vmem:[%s2365_s1 + $0x30] sm:$0xff]  ;;  %v1625_v30 = vpack.c.bf16 %v263_v27, %v262_v26  ;;  %v1597_v31 = vpack.c.bf16 %v249_v24, %v248_v23  ;;  %v233_v32 = vld [vmem:[%s2365_s1 + $0x38] sm:$0xff]  ;;  %v250_v35 = vld [vmem:[%s2365_s1 + $0xc0] sm:$0xff]  ;;  %vm802_vm15 = vcmask 96320   ;;  %s1813_s25 = smov 12  }
   0xe   : > { %1622 = vmatprep.subr.bf16.mxu1 %v1621_v25  ;;  %1594 = vmatprep.subr.bf16.mxu0 %v1593_v19  ;;  %v264_v33 = vld [vmem:[%s2365_s1 + $0x130] sm:$0xff]  ;;  %v265_v34 = vld [vmem:[%s2365_s1 + $0x138] sm:$0xff]  ;;  %s1277_s11 = sshll.u32 %s2370_s13, 4  ;;  %v251_v36 = vld [vmem:[%s2365_s1 + $0xc8] sm:$0xff]  ;;  %v1599_v37 = vpack.c.bf16 %v233_v32, %v232_v29 }
   0xf   : > { %v234_v38 = vld [vmem:[%s2365_s1 + $0x40] sm:$0xff]  ;;  %v1629_v39 = vpack.c.bf16 %v265_v34, %v264_v33  ;;  %s165_s22 = scalar_lea.vmem %s2364_s0, %s1277_s11  ;;  %v1601_v40 = vpack.c.bf16 %v251_v36, %v250_v35  ;;  %v235_v41 = vld [vmem:[%s2365_s1 + $0x48] sm:$0xff]  ;;  %v252_v44 = vld [vmem:[%s2365_s1 + $0xd0] sm:$0xff]  ;;  %s170_s29 = scalar_lea.vmem %s2367_s3, %s1277_s11 }
  0x10   : > { %v266_v42 = vld [vmem:[%s2365_s1 + $0x140] sm:$0xff]  ;;  %v267_v43 = vld [vmem:[%s2365_s1 + $0x148] sm:$0xff]  ;;  %v253_v45 = vld [vmem:[%s2365_s1 + $0xd8] sm:$0xff]  ;;  %v1603_v47 = vpack.c.bf16 %v235_v41, %v234_v38 }
  0x11   : > { %1624 = vmatpush3.bf16.msra.mxu1 %v1621_v25  ;;  %1596 = vmatpush3.bf16.msra.mxu0 %v1595_v28  ;;  %v183_v46 = vld [vmem:[%s165_s22] sm:$0xff]  ;;  %v236_v48 = vld [vmem:[%s2365_s1 + $0x50] sm:$0xff]  ;;  %v1633_v49 = vpack.c.bf16 %v267_v43, %v266_v42  ;;  %v1970_v52 = vld [vmem:[%s165_s22 + $0x8] sm:$0xff]  ;;  %v1605_v53 = vpack.c.bf16 %v253_v45, %v252_v44  ;;  %s1812_s22 = smov 8  }
  0x12   : > { %1626 = vmatprep.subr.bf16.mxu1 %v1625_v30  ;;  %1598 = vmatprep.subr.bf16.mxu0 %v1597_v31  ;;  %v188_v50 = vrot.slane %v183_v46, 7  ;;  %200 = vst.msk [vmem:[#allocation2 + $0x20] sm:$0xff] %vm196_vm0, %v183_v46  ;;  %v203_v51 = vrot.slane %v183_v46, 1  ;;  %v237_v54 = vld [vmem:[%s2365_s1 + $0x58] sm:$0xff]  ;;  %v268_v55 = vld [vmem:[%s2365_s1 + $0x150] sm:$0xff]  ;;  %v189_v57 = vrot.slane %v1970_v52, 7 }
  0x13   : > { %v269_v56 = vld [vmem:[%s2365_s1 + $0x158] sm:$0xff]  ;;  %201 = vst.msk [vmem:[#allocation2 + $0x38] sm:$0xff] %vm196_vm0, %v1970_v52  ;;  %v204_v58 = vrot.slane %v1970_v52, 1  ;;  %v254_v59 = vld [vmem:[%s2365_s1 + $0xe0] sm:$0xff]  ;;  %v255_v60 = vld [vmem:[%s2365_s1 + $0xe8] sm:$0xff]  ;;  %v1607_v63 = vpack.c.bf16 %v237_v54, %v236_v48 }
  0x14   : > { %195 = vst.msk [vmem:[#allocation2 + $0x18] sm:$0xfe] %vm194_vm1, %v188_v50  ;;  %v190_v61 = vsel %vm187_vm3, %v188_v50, %v189_v57  ;;  %v238_v0 = vld [vmem:[%s2365_s1 + $0x60] sm:$0xff]  ;;  %v1637_v1 = vpack.c.bf16 %v269_v56, %v268_v55  ;;  %v1609_v2 = vpack.c.bf16 %v255_v60, %v254_v59  ;;  %v239_v3 = vld [vmem:[%s2365_s1 + $0x68] sm:$0xff]  ;;  %v256_v6 = vld [vmem:[%s2365_s1 + $0xf0] sm:$0xff]  ;;  %vm1071_vm1 = vcmask 130144  }
  0x15   : > { %1628 = vmatpush3.bf16.msra.mxu1 %v1625_v30  ;;  %1600 = vmatpush3.bf16.msra.mxu0 %v1599_v37  ;;  %210 = vst.msk [vmem:[#allocation2 + $0x10] sm:$0x80] %vm209_vm2, %v203_v51  ;;  %v205_v62 = vsel %vm202_vm4, %v203_v51, %v204_v58  ;;  %v270_v4 = vld [vmem:[%s2365_s1 + $0x160] sm:$0xff]  ;;  %v271_v5 = vld [vmem:[%s2365_s1 + $0x168] sm:$0xff]  ;;  %v257_v8 = vld [vmem:[%s2365_s1 + $0xf8] sm:$0xff]  ;;  %v1611_v9 = vpack.c.bf16 %v239_v3, %v238_v0  ;;  %vm1095_vm2 = vcmask 130151  }
  0x16   : > { %1630 = vmatprep.subr.bf16.mxu1 %v1629_v39  ;;  %1602 = vmatprep.subr.bf16.mxu0 %v1601_v40  ;;  %213 = vst.msk [vmem:[#allocation2 + $0x40] sm:$0x7f] %vm212_vm5, %v204_v58  ;;  %v240_v10 = vld [vmem:[%s2365_s1 + $0x70] sm:$0xff]  ;;  %v241_v11 = vld [vmem:[%s2365_s1 + $0x78] sm:$0xff]  ;;  %v1641_v12 = vpack.c.bf16 %v271_v5, %v270_v4  ;;  %v1613_v13 = vpack.c.bf16 %v257_v8, %v256_v6  ;;  %v1187_v25 = vld [vmem:[%s2365_s1 + $0x200] sm:$0xff]  ;;  %vm1069_vm5 = vcmask 130145  }
  0x17   : > { %197 = vst.msk [vmem:[#allocation2 + $0x30] sm:$0xff] %vm196_vm0, %v190_v61  ;;  %211 = vst.msk [vmem:[#allocation2 + $0x28] sm:$0xff] %vm196_vm0, %v205_v62  ;;  %v272_v14 = vld [vmem:[%s2365_s1 + $0x170] sm:$0xff]  ;;  %v273_v15 = vld [vmem:[%s2365_s1 + $0x178] sm:$0xff]  ;;  %v1615_v17 = vpack.c.bf16 %v241_v11, %v240_v10  ;;  %vm777_vm0 = vcmask 90176  }
  0x18   : > { %v1645_v18 = vpack.c.bf16 %v273_v15, %v272_v14  ;;  %v1188_v26 = vld [vmem:[%s2365_s1 + $0x208] sm:$0xff]  ;;  %v1171_v27 = vld [vmem:[%s2365_s1 + $0x180] sm:$0xff]  ;;  %v1189_v30 = vld [vmem:[%s2365_s1 + $0x210] sm:$0xff]  ;;  %199 = vst.msk [vmem:[#allocation2 + $0x48] sm:$0x1] %vm198_vm6, %v189_v57 }
  0x19   : > { %1632 = vmatpush3.bf16.msra.mxu1 %v1629_v39  ;;  %1604 = vmatpush3.bf16.msra.mxu0 %v1603_v47  ;;  %v218_v19 = vld [vmem:[#allocation2 + $0x20] sm:$0xff]  ;;  %v1649_v28 = vpack.c.bf16 %v1188_v26, %v1187_v25  ;;  %v1172_v29 = vld [vmem:[%s2365_s1 + $0x188] sm:$0xff]  ;;  %v1190_v31 = vld [vmem:[%s2365_s1 + $0x218] sm:$0xff] }
  0x1a   : > { %1634 = vmatprep.subr.bf16.mxu1 %v1633_v49  ;;  %1606 = vmatprep.subr.bf16.mxu0 %v1605_v53  ;;  %v221_v23 = vld [vmem:[#allocation2 + $0x38] sm:$0xff]  ;;  %v1651_v32 = vpack.c.bf16 %v1172_v29, %v1171_v27  ;;  %v1653_v33 = vpack.c.bf16 %v1190_v31, %v1189_v30  ;;  %v1173_v34 = vld [vmem:[%s2365_s1 + $0x190] sm:$0xff]  ;;  %v1191_v36 = vld [vmem:[%s2365_s1 + $0x220] sm:$0xff] }
  0x1b   : > { %v217_v21 = vld [vmem:[#allocation2 + $0x18] sm:$0xff]  ;;  %v1192_v37 = vld [vmem:[%s2365_s1 + $0x228] sm:$0xff]  ;;  %v1203_v39 = vld [vmem:[%s2365_s1 + $0x280] sm:$0xff] }
  0x1c   : > { %v216_v16 = vld [vmem:[#allocation2 + $0x10] sm:$0xff]  ;;  %v1174_v35 = vld [vmem:[%s2365_s1 + $0x198] sm:$0xff]  ;;  %v1204_v40 = vld [vmem:[%s2365_s1 + $0x288] sm:$0xff]  ;;  %v1657_v41 = vpack.c.bf16 %v1192_v37, %v1191_v36 }
  0x1d   : > { %1636 = vmatpush3.bf16.msra.mxu1 %v1633_v49  ;;  %1608 = vmatpush3.bf16.msra.mxu0 %v1607_v63  ;;  %v222_v22 = vld [vmem:[#allocation2 + $0x40] sm:$0xff]  ;;  %v1655_v38 = vpack.c.bf16 %v1174_v35, %v1173_v34  ;;  %v1176_v43 = vld [vmem:[%s2365_s1 + $0x1a8] sm:$0xff]  ;;  %v1681_v44 = vpack.c.bf16 %v1204_v40, %v1203_v39  ;;  %v1193_v45 = vld [vmem:[%s2365_s1 + $0x230] sm:$0xff] }
  0x1e   : > { %1638 = vmatprep.subr.bf16.mxu1 %v1637_v1  ;;  %1610 = vmatprep.subr.bf16.mxu0 %v1609_v2  ;;  %v219_v20 = vld [vmem:[#allocation2 + $0x28] sm:$0xff]  ;;  %v220_v24 = vld [vmem:[#allocation2 + $0x30] sm:$0xff]  ;;  %v1175_v42 = vld [vmem:[%s2365_s1 + $0x1a0] sm:$0xff] }
  0x1f   : > { %1503 = vmatprep.mubr.f32.mxu1 %v216_v16  ;;  %v1194_v46 = vld [vmem:[%s2365_s1 + $0x238] sm:$0xff]  ;;  %v1205_v47 = vld [vmem:[%s2365_s1 + $0x290] sm:$0xff]  ;;  %v1659_v50 = vpack.c.bf16 %v1176_v43, %v1175_v42  ;;  %v1207_v51 = vld [vmem:[%s2365_s1 + $0x2a0] sm:$0xff] }
  0x20   : > { %v1206_v48 = vld [vmem:[%s2365_s1 + $0x298] sm:$0xff]  ;;  %v1208_v53 = vld [vmem:[%s2365_s1 + $0x2a8] sm:$0xff]  ;;  %v1661_v54 = vpack.c.bf16 %v1194_v46, %v1193_v45  ;;  %v1177_v55 = vld [vmem:[%s2365_s1 + $0x1b0] sm:$0xff] }
  0x21   : > { %1640 = vmatpush3.bf16.msra.mxu1 %v1637_v1  ;;  %1612 = vmatpush3.bf16.msra.mxu0 %v1611_v9  ;;  %v1685_v49 = vpack.c.bf16 %v1206_v48, %v1205_v47  ;;  %v1178_v56 = vld [vmem:[%s2365_s1 + $0x1b8] sm:$0xff]  ;;  %v1195_v58 = vld [vmem:[%s2365_s1 + $0x240] sm:$0xff]  ;;  %v1689_v59 = vpack.c.bf16 %v1208_v53, %v1207_v51  ;;  %v1196_v60 = vld [vmem:[%s2365_s1 + $0x248] sm:$0xff] }
  0x22   : > { %1642 = vmatprep.subr.bf16.mxu1 %v1641_v12  ;;  %1614 = vmatprep.subr.bf16.mxu0 %v1613_v13  ;;  %v1209_v61 = vld [vmem:[%s2365_s1 + $0x2b0] sm:$0xff]  ;;  %v1210_v62 = vld [vmem:[%s2365_s1 + $0x2b8] sm:$0xff]  ;;  %v1663_v63 = vpack.c.bf16 %v1178_v56, %v1177_v55  ;;  %v1665_v0 = vpack.c.bf16 %v1196_v60, %v1195_v58  ;;  %v1179_v1 = vld [vmem:[%s2365_s1 + $0x1c0] sm:$0xff] }
  0x23   : > { %v1180_v2 = vld [vmem:[%s2365_s1 + $0x1c8] sm:$0xff]  ;;  %v1693_v3 = vpack.c.bf16 %v1210_v62, %v1209_v61  ;;  %v1197_v4 = vld [vmem:[%s2365_s1 + $0x250] sm:$0xff]  ;;  %v1198_v5 = vld [vmem:[%s2365_s1 + $0x258] sm:$0xff] }
  0x24   : > { %v1667_v6 = vpack.c.bf16 %v1180_v2, %v1179_v1  ;;  %v1669_v8 = vpack.c.bf16 %v1198_v5, %v1197_v4  ;;  %v1181_v9 = vld [vmem:[%s2365_s1 + $0x1d0] sm:$0xff]  ;;  %v1182_v10 = vld [vmem:[%s2365_s1 + $0x1d8] sm:$0xff]  ;;  %v1199_v11 = vld [vmem:[%s2365_s1 + $0x260] sm:$0xff] }
  0x25   : > { %1644 = vmatpush3.bf16.msra.mxu1 %v1641_v12  ;;  %1616 = vmatpush3.bf16.msra.mxu0 %v1615_v17  ;;  %v1200_v12 = vld [vmem:[%s2365_s1 + $0x268] sm:$0xff]  ;;  %v1671_v13 = vpack.c.bf16 %v1182_v10, %v1181_v9  ;;  %v1183_v36 = vld [vmem:[%s2365_s1 + $0x1e0] sm:$0xff]  ;;  %v1201_v40 = vld [vmem:[%s2365_s1 + $0x270] sm:$0xff] }
  0x26   : > { %1646 = vmatprep.subr.bf16.mxu1 %v1645_v18  ;;  %1650 = vmatprep.subr.bf16.mxu0 %v1649_v28  ;;  %v1673_v14 = vpack.c.bf16 %v1200_v12, %v1199_v11  ;;  %v1184_v37 = vld [vmem:[%s2365_s1 + $0x1e8] sm:$0xff]  ;;  %v1211_v39 = vld [vmem:[%s2365_s1 + $0x2c0] sm:$0xff]  ;;  %v1185_v43 = vld [vmem:[%s2365_s1 + $0x1f0] sm:$0xff] }
  0x27   : > { %v1212_v52 = vld [vmem:[%s2365_s1 + $0x2c8] sm:$0xff]  ;;  %v1213_v47 = vld [vmem:[%s2365_s1 + $0x2d0] sm:$0xff]  ;;  %v1214_v48 = vld [vmem:[%s2365_s1 + $0x2d8] sm:$0xff] }
  0x28   : > { %346 = vmatmul.mubr.f32.vlgmr.msra.gmra.mrb[0].mxu0 %v1810_v7  ;;  %v1697_v57 = vpack.c.bf16 %v1212_v52, %v1211_v39  ;;  %v223_v45 = vld [vmem:[#allocation2 + $0x48] sm:$0xff]  ;;  %v1215_v55 = vld [vmem:[%s2365_s1 + $0x2e0] sm:$0xff]  ;;  %v1217_v1 = vld [vmem:[%s2365_s1 + $0x2f0] sm:$0xff] }
  0x29   : > { %1648 = vmatpush3.bf16.msra.mxu1 %v1645_v18  ;;  %349 = vmatprep.mubr.f32.mxu0 %v218_v19  ;;  %v1216_v56 = vld [vmem:[%s2365_s1 + $0x2e8] sm:$0xff]  ;;  %v1218_v2 = vld [vmem:[%s2365_s1 + $0x2f8] sm:$0xff] }
  0x2a   : > { %1652 = vmatpush3.bf16.msra.mxu0 %v1651_v32  ;;  %1682 = vmatprep.subr.bf16.mxu1 %v1681_v44  ;;  %v1242_v39 = vld [vmem:[%s2365_s1 + $0x398] sm:$0xff] }
  0x2b   : > { %1654 = vmatprep.subr.bf16.mxu0 %v1653_v33 }
  0x2c   : > { %1504 = vmatmul.mubr.f32.vlgmr.msra.gmra.mrb[0].mxu1 %v219_v20  ;;  %350 = vmatmul.mubr.f32.gmra.mrb[2].mxu0 %v217_v21  ;;  %v1168_v21 = vld [vmem:[%s2366_s2] ss:$0 sm:$0xff] }
  0x2d   : > { %1506 = vmatprep.mubr.f32.mxu1 %v222_v22  ;;  %354 = vmatprep.mubr.f32.mxu0 %v221_v23 }
  0x2e   : > { %1656 = vmatpush3.bf16.msra.mxu0 %v1655_v38  ;;  %1684 = vmatpush3.bf16.msra.mxu1 %v1681_v44  ;;  %v1675_v38 = vpack.c.bf16 %v1184_v37, %v1183_v36  ;;  %v1186_v44 = vld [vmem:[%s2365_s1 + $0x1f8] sm:$0xff]  ;;  %v1224_v37 = vld [vmem:[%s2365_s1 + $0x308] sm:$0xff] }
  0x2f   : > { %1658 = vmatprep.subr.bf16.mxu0 %v1657_v41  ;;  %1686 = vmatprep.subr.bf16.mxu1 %v1685_v49  ;;  %v1202_v41 = vld [vmem:[%s2365_s1 + $0x278] sm:$0xff]  ;;  %v1679_v46 = vpack.c.bf16 %v1186_v44, %v1185_v43  ;;  %v1244_v43 = vld [vmem:[%s2365_s1 + $0x3a8] sm:$0xff] }
  0x30   : > { %1507 = vmatmul.mubr.f32.gmra.mrb[2].mxu1 %v1810_v7  ;;  %355 = vmatmul.mubr.f32.gmra.mrb[4].mxu0 %v220_v24  ;;  %v1677_v42 = vpack.c.bf16 %v1202_v41, %v1201_v40  ;;  %v1225_v40 = vld [vmem:[%s2365_s1 + $0x310] sm:$0xff]  ;;  %v1226_v41 = vld [vmem:[%s2365_s1 + $0x318] sm:$0xff] }
  0x31   : > { %359 = vmatprep.mubr.f32.mxu0 %v1810_v7  ;;  %v1719_v44 = vpack.c.bf16 %v1226_v41, %v1225_v40 }
  0x32   : > { %1660 = vmatpush3.bf16.msra.mxu0 %v1659_v50  ;;  %1688 = vmatpush3.bf16.msra.mxu1 %v1685_v49  ;;  %v1701_v50 = vpack.c.bf16 %v1214_v48, %v1213_v47  ;;  %v1227_v47 = vld [vmem:[%s2365_s1 + $0x320] sm:$0xff]  ;;  %v1228_v48 = vld [vmem:[%s2365_s1 + $0x328] sm:$0xff] }
  0x33   : > { %1662 = vmatprep.subr.bf16.mxu0 %v1661_v54  ;;  %1690 = vmatprep.subr.bf16.mxu1 %v1689_v59 }
  0x34   : > { %360 = vmatmul.mubr.f32.gmra.mrb[6].mxu0 %v223_v45  ;;  %v1255_v45 = vld [vmem:[%s2365_s1 + $0x400] sm:$0xff] }
  0x35   : > { %641 = vmatprep.mubr.f32.mxu0 %v1810_v7 }
  0x36   : > { %1664 = vmatpush3.bf16.msra.mxu0 %v1663_v63  ;;  %1692 = vmatpush3.bf16.msra.mxu1 %v1689_v59  ;;  %v1705_v59 = vpack.c.bf16 %v1216_v56, %v1215_v55  ;;  %v1258_v55 = vld [vmem:[%s2365_s1 + $0x418] sm:$0xff]  ;;  %v1723_v56 = vpack.c.bf16 %v1228_v48, %v1227_v47  ;;  %v1264_v47 = vld [vmem:[%s2365_s1 + $0x448] sm:$0xff]  ;;  %v1237_v48 = vld [vmem:[%s2365_s1 + $0x370] sm:$0xff] }
  0x37   : > { %1666 = vmatprep.subr.bf16.mxu0 %v1665_v0  ;;  %1694 = vmatprep.subr.bf16.mxu1 %v1693_v3 }
  0x3a   : > { %1668 = vmatpush3.bf16.msra.mxu0 %v1667_v6  ;;  %1696 = vmatpush3.bf16.msra.mxu1 %v1693_v3  ;;  %v1709_v3 = vpack.c.bf16 %v1218_v2, %v1217_v1  ;;  %v1248_v1 = vld [vmem:[%s2365_s1 + $0x3c8] sm:$0xff] }
  0x3b   : > { %1670 = vmatprep.subr.bf16.mxu0 %v1669_v8  ;;  %1698 = vmatprep.subr.bf16.mxu1 %v1697_v57 }
  0x3e   : > { %1672 = vmatpush3.bf16.msra.mxu0 %v1671_v13  ;;  %1700 = vmatpush3.bf16.msra.mxu1 %v1697_v57 }
  0x3f   : > { %1674 = vmatprep.subr.bf16.mxu0 %v1673_v14  ;;  %1702 = vmatprep.subr.bf16.mxu1 %v1701_v50 }
  0x42   : > { %1676 = vmatpush3.bf16.msra.mxu0 %v1675_v38  ;;  %1704 = vmatpush3.bf16.msra.mxu1 %v1701_v50  ;;  %v1241_v38 = vld [vmem:[%s2365_s1 + $0x390] sm:$0xff] }
  0x43   : > { %1678 = vmatprep.subr.bf16.mxu0 %v1677_v42  ;;  %1706 = vmatprep.subr.bf16.mxu1 %v1705_v59  ;;  %v1717_v57 = vpack.c.bf16 %v1242_v39, %v1241_v38  ;;  %v1243_v42 = vld [vmem:[%s2365_s1 + $0x3a0] sm:$0xff]  ;;  %v1245_v50 = vld [vmem:[%s2365_s1 + $0x3b0] sm:$0xff] }
  0x46   : > { %1680 = vmatpush3.bf16.msra.mxu0 %v1679_v46  ;;  %1708 = vmatpush3.bf16.msra.mxu1 %v1705_v59  ;;  %v1721_v46 = vpack.c.bf16 %v1244_v43, %v1243_v42  ;;  %v1259_v59 = vld [vmem:[%s2365_s1 + $0x420] sm:$0xff]  ;;  %v1253_v43 = vld [vmem:[%s2365_s1 + $0x3f0] sm:$0xff] }
  0x47   : > { %1710 = vmatprep.subr.bf16.mxu1 %v1709_v3 }
  0x49   : > { %642 = vmatmul.mubr.f32.vlgmr.msra.gmra.mrb[8].mxu0 %v1810_v7 }
  0x4a   : > { %1712 = vmatpush3.bf16.msra.mxu1 %v1709_v3  ;;  %v1261_v3 = vld [vmem:[%s2365_s1 + $0x430] sm:$0xff] }
  0xfb   : > { %v1311_v15 = vpop.f32.mrb[0].mxu0 }
  0xfc   : > { %v1312_v16 = vpop.f32.mrb[1].mxu0 }
  0xff   : > { %v1505_v17 = vpop.f32.mrb[0].mxu1  ;;  %v1314_v18 = vpop.f32.mrb[2].mxu0 }
 0x100   : > { %v430_v19 = vpop.f32.mrb[1].mxu1  ;;  %v1315_v20 = vpop.f32.mrb[3].mxu0 }
 0x101   : > { %v1316_v22 = vadd.f32 %v1315_v20, %v1314_v18 }
 0x103   : > { %v1508_v23 = vpop.f32.mrb[2].mxu1  ;;  %v1317_v24 = vpop.f32.mrb[4].mxu0  ;;  %v352_v25 = vadd.f32 %v1316_v22, %v1168_v21 }
 0x104   : > { %v439_v26 = vpop.f32.mrb[3].mxu1  ;;  %v1318_v27 = vpop.f32.mrb[5].mxu0 }
 0x105   : > { %v435_v28 = vadd.f32 %v1505_v17, %v352_v25  ;;  %v1319_v29 = vadd.f32 %v1318_v27, %v1317_v24 }
 0x107   : > { %v449_v30 = vmin.f32 %v435_v28, 0.0  ;;  %v357_v31 = vadd.f32 %v1319_v29, %v1168_v21  ;;  %v447_v53 = vmax.f32 %v435_v28, 0.0  ;;  %v1320_v29 = vpop.f32.mrb[6].mxu0 }
 0x109   : > { %v451_v32 = vmul.f32 1.442695, %v449_v30  ;;  %v440_v33 = vadd.f32 %v439_v26, %v357_v31  ;;  %v1321_v30 = vpop.f32.mrb[7].mxu0 }
 0x10b   : > { %1789 = vpow2.f32 %v451_v32  ;;  %v450_v34 = vmin.f32 %v440_v33, 0.0  ;;  %v448_v62 = vmax.f32 %v440_v33, 0.0  ;;  %v1239_v33 = vld [vmem:[%s2365_s1 + $0x380] sm:$0xff] }
 0x10d   : > { %v453_v35 = vmul.f32 1.442695, %v450_v34  ;;  %v1240_v34 = vld [vmem:[%s2365_s1 + $0x388] sm:$0xff] }
 0x10e   : > { %v1713_v36 = vpack.c.bf16 %v1240_v34, %v1239_v33 }
 0x10f   : > { %1791 = vpow2.f32 %v453_v35  ;;  %v1223_v35 = vld [vmem:[%s2365_s1 + $0x300] sm:$0xff] }
 0x110   : > { %v1715_v52 = vpack.c.bf16 %v1224_v37, %v1223_v35  ;;  %1714 = vmatprep.subr.bf16.mxu0 %v1713_v36 }
 0x112   : > { %1716 = vmatpush3.bf16.msra.mxu0 %v1715_v52 }
 0x113   : > { %1718 = vmatprep.subr.bf16.mxu0 %v1717_v57 }
 0x115   : > { %v1790_v49 = vpop.eup %1789 }
 0x116   : > { %v1169_v51 = vadd.f32 -1.0, %v1790_v49  ;;  %v1256_v49 = vld [vmem:[%s2365_s1 + $0x408] sm:$0xff]  ;;  %1720 = vmatpush3.bf16.msra.mxu0 %v1719_v44  ;;  %v1254_v44 = vld [vmem:[%s2365_s1 + $0x3f8] sm:$0xff] }
 0x117   : > { %1722 = vmatprep.subr.bf16.mxu0 %v1721_v46  ;;  %v1741_v46 = vpack.c.bf16 %v1254_v44, %v1253_v43 }
 0x118   : > { %v457_v54 = vmul.f32 1.6732632, %v1169_v51  ;;  %v1246_v51 = vld [vmem:[%s2365_s1 + $0x3b8] sm:$0xff] }
 0x119   : > { %v1792_v58 = vpop.eup %1791 }
 0x11a   : > { %v1170_v60 = vadd.f32 -1.0, %v1792_v58  ;;  %v459_v61 = vadd.f32 %v457_v54, %v447_v53  ;;  %v1745_v53 = vpack.c.bf16 %v1256_v49, %v1255_v45  ;;  %v1257_v54 = vld [vmem:[%s2365_s1 + $0x410] sm:$0xff]  ;;  %1724 = vmatpush3.bf16.msra.mxu0 %v1723_v56  ;;  %v1263_v45 = vld [vmem:[%s2365_s1 + $0x440] sm:$0xff]  ;;  %v1238_v49 = vld [vmem:[%s2365_s1 + $0x378] sm:$0xff] }
 0x11b   : > { %v1749_v58 = vpack.c.bf16 %v1258_v55, %v1257_v54  ;;  %v1266_v54 = vld [vmem:[%s2365_s1 + $0x458] sm:$0xff] }
 0x11c   : > { %v461_v63 = vmul.f32 1.050701, %v459_v61  ;;  %v458_v0 = vmul.f32 1.6732632, %v1170_v60  ;;  %v1375_v31 = vpop.f32.mrb[8].mxu0  ;;  %1746 = vmatprep.subr.bf16.mxu1 %v1745_v53  ;;  %v1725_v60 = vpack.c.bf16 %v1246_v51, %v1245_v50  ;;  %v1229_v61 = vld [vmem:[%s2365_s1 + $0x330] sm:$0xff]  ;;  %v1761_v50 = vpack.c.bf16 %v1264_v47, %v1263_v45 }
 0x11d   : > { %v1376_v32 = vpop.f32.mrb[9].mxu0  ;;  %v1743_v51 = vpack.c.bf16 %v1238_v49, %v1237_v48 }
 0x11e   : > { %483 = vrot.lane.b32.xlu0 %v461_v63, %s1811_s19  ;;  %v491_v4 = vrot.slane %v461_v63, 1  ;;  %v460_v5 = vadd.f32 %v458_v0, %v448_v62  ;;  %v465_v6 = vrot.slane %v461_v63, 7  ;;  %v1230_v62 = vld [vmem:[%s2365_s1 + $0x338] sm:$0xff]  ;;  %v1260_v63 = vld [vmem:[%s2365_s1 + $0x428] sm:$0xff]  ;;  %v1247_v0 = vld [vmem:[%s2365_s1 + $0x3c0] sm:$0xff]  ;;  %1726 = vmatprep.subr.bf16.mxu0 %v1725_v60 }
 0x11f   : > { %v1753_v2 = vpack.c.bf16 %v1260_v63, %v1259_v59 }
 0x120   : > { %494 = vrot.lane.b32.xlu1 %v491_v4, %s1811_s19  ;;  %v462_v8 = vmul.f32 1.050701, %v460_v5  ;;  %v1727_v5 = vpack.c.bf16 %v1230_v62, %v1229_v61  ;;  %v1267_v61 = vld [vmem:[%s2365_s1 + $0x460] sm:$0xff]  ;;  %v1268_v62 = vld [vmem:[%s2365_s1 + $0x468] sm:$0xff] }
 0x121   : > { %v1769_v63 = vpack.c.bf16 %v1268_v62, %v1267_v61 }
 0x122   : > { %468 = vrot.lane.b32.xlu0 %v465_v6, %s1811_s19  ;;  %v466_v9 = vrot.slane %v462_v8, 7  ;;  %v492_v10 = vrot.slane %v462_v8, 1  ;;  %1728 = vmatpush3.bf16.msra.mxu0 %v1727_v5 }
 0x124   : > { %485 = vrot.lane.b32.xlu1 %v462_v8, %s1811_s19  ;;  %v467_v11 = vsel %vm187_vm3, %v465_v6, %v466_v9  ;;  %v493_v12 = vsel %vm202_vm4, %v491_v4, %v492_v10  ;;  %v1262_v4 = vld [vmem:[%s2365_s1 + $0x438] sm:$0xff]  ;;  %v1729_v6 = vpack.c.bf16 %v1248_v1, %v1247_v0  ;;  %v1231_v8 = vld [vmem:[%s2365_s1 + $0x340] sm:$0xff] }
 0x126   : > { %470 = vrot.lane.b32.xlu0 %v467_v11, %s1811_s19  ;;  %v1250_v11 = vld [vmem:[%s2365_s1 + $0x3d8] sm:$0xff]  ;;  %1730 = vmatprep.subr.bf16.mxu0 %v1729_v6 }
 0x128   : > { %496 = vrot.lane.b32.xlu1 %v493_v12, %s1811_s19  ;;  %v1757_v12 = vpack.c.bf16 %v1262_v4, %v1261_v3  ;;  %v1270_v4 = vld [vmem:[%s2365_s1 + $0x478] sm:$0xff] }
 0x12a   : > { %498 = vrot.lane.b32.xlu0 %v492_v10, %s1811_s19  ;;  %v1249_v10 = vld [vmem:[%s2365_s1 + $0x3d0] sm:$0xff] }
 0x12c   : > { %472 = vrot.lane.b32.xlu1 %v466_v9, %s1811_s19  ;;  %v1232_v9 = vld [vmem:[%s2365_s1 + $0x348] sm:$0xff] }
 0x190   : > { %v484_v13 = vpop.permute.xlu0 %483 }
 0x191   : > { %489 = vst.msk [vmem:[#allocation2 + $0x20] sm:$0xff] %vm479_vm7, %v484_v13  ;;  %v1731_v13 = vpack.c.bf16 %v1232_v9, %v1231_v8 }
 0x192   : > { %v495_v14 = vpop.permute.xlu1 %494 }
 0x193   : > { %504 = vst.msk [vmem:[#allocation2 + $0x10] sm:$0x80] %vm503_vm8, %v495_v14  ;;  %v1733_v14 = vpack.c.bf16 %v1250_v11, %v1249_v10  ;;  %1732 = vmatpush3.bf16.msra.mxu0 %v1731_v13 }
 0x194   : > { %v469_v15 = vpop.permute.xlu0 %468 }
 0x195   : > { %478 = vst.msk [vmem:[#allocation2 + $0x18] sm:$0xfe] %vm477_vm9, %v469_v15  ;;  %v1233_v15 = vld [vmem:[%s2365_s1 + $0x350] sm:$0xff]  ;;  %1734 = vmatprep.subr.bf16.mxu0 %v1733_v14 }
 0x196   : > { %v486_v16 = vpop.permute.xlu1 %485 }
 0x197   : > { %490 = vst.msk [vmem:[#allocation2 + $0x38] sm:$0xff] %vm479_vm7, %v486_v16  ;;  %v1234_v16 = vld [vmem:[%s2365_s1 + $0x358] sm:$0xff] }
 0x198   : > { %v471_v17 = vpop.permute.xlu0 %470  ;;  %v512_v18 = vld [vmem:[#allocation2 + $0x20] sm:$0xff] }
 0x199   : > { %480 = vst.msk [vmem:[#allocation2 + $0x30] sm:$0xff] %vm479_vm7, %v471_v17  ;;  %645 = vmatprep.mubr.f32.mxu0 %v512_v18  ;;  %v1251_v17 = vld [vmem:[%s2365_s1 + $0x3e0] sm:$0xff]  ;;  %v1252_v18 = vld [vmem:[%s2365_s1 + $0x3e8] sm:$0xff] }
 0x19a   : > { %v497_v19 = vpop.permute.xlu1 %496  ;;  %v510_v20 = vld [vmem:[#allocation2 + $0x10] sm:$0xff] }
 0x19b   : > { %505 = vst.msk [vmem:[#allocation2 + $0x28] sm:$0xff] %vm479_vm7, %v497_v19  ;;  %1541 = vmatprep.mubr.f32.mxu1 %v510_v20  ;;  %v1735_v19 = vpack.c.bf16 %v1234_v16, %v1233_v15  ;;  %v1737_v20 = vpack.c.bf16 %v1252_v18, %v1251_v17 }
 0x19c   : > { %v499_v21 = vpop.permute.xlu0 %498  ;;  %v511_v22 = vld [vmem:[#allocation2 + $0x18] sm:$0xff] }
 0x19d   : > { %507 = vst.msk [vmem:[#allocation2 + $0x40] sm:$0x7f] %vm506_vm10, %v499_v21  ;;  %646 = vmatmul.mubr.f32.gmra.mrb[10].mxu0 %v511_v22  ;;  %v1235_v21 = vld [vmem:[%s2365_s1 + $0x360] sm:$0xff]  ;;  %v1236_v22 = vld [vmem:[%s2365_s1 + $0x368] sm:$0xff] }
 0x19e   : > { %v473_v23 = vpop.permute.xlu1 %472  ;;  %v515_v24 = vld [vmem:[#allocation2 + $0x38] sm:$0xff]  ;;  %1736 = vmatpush3.bf16.msra.mxu0 %v1735_v19 }
 0x19f   : > { %482 = vst.msk [vmem:[#allocation2 + $0x48] sm:$0x1] %vm481_vm11, %v473_v23  ;;  %650 = vmatprep.mubr.f32.mxu0 %v515_v24  ;;  %v1739_v23 = vpack.c.bf16 %v1236_v22, %v1235_v21  ;;  %1738 = vmatprep.subr.bf16.mxu0 %v1737_v20 }
 0x1a0   : > { %v514_v25 = vld [vmem:[#allocation2 + $0x30] sm:$0xff] }
 0x1a1   : > { %651 = vmatmul.mubr.f32.gmra.mrb[12].mxu0 %v514_v25 }
 0x1a2   : > { %v513_v26 = vld [vmem:[#allocation2 + $0x28] sm:$0xff]  ;;  %655 = vmatprep.mubr.f32.mxu0 %v1810_v7  ;;  %1740 = vmatpush3.bf16.msra.mxu0 %v1739_v23 }
 0x1a3   : > { %1542 = vmatmul.mubr.f32.vlgmr.msra.gmra.mrb[4].mxu1 %v513_v26  ;;  %v1220_v26 = vld [vmem:[%s2366_s2 + $0x1] ss:$0 sm:$0xff]  ;;  %1742 = vmatprep.subr.bf16.mxu0 %v1741_v46 }
 0x1a4   : > { %v516_v27 = vld [vmem:[#allocation2 + $0x40] sm:$0xff]  ;;  %1748 = vmatpush3.bf16.msra.mxu1 %v1745_v53  ;;  %v1265_v53 = vld [vmem:[%s2365_s1 + $0x450] sm:$0xff] }
 0x1a5   : > { %1544 = vmatprep.mubr.f32.mxu1 %v516_v27  ;;  %1750 = vmatprep.subr.bf16.mxu1 %v1749_v58  ;;  %v1765_v56 = vpack.c.bf16 %v1266_v54, %v1265_v53 }
 0x1a6   : > { %v517_v28 = vld [vmem:[#allocation2 + $0x48] sm:$0xff]  ;;  %1744 = vmatpush3.bf16.msra.mxu0 %v1743_v51 }
 0x1a7   : > { %656 = vmatmul.mubr.f32.gmra.mrb[14].mxu0 %v517_v28  ;;  %1545 = vmatmul.mubr.f32.gmra.mrb[6].mxu1 %v1810_v7 }
 0x1a8   : > { %937 = vmatprep.mubr.f32.mxu0 %v1810_v7  ;;  %1752 = vmatpush3.bf16.msra.mxu1 %v1749_v58 }
 0x1a9   : > { %1754 = vmatprep.subr.bf16.mxu1 %v1753_v2 }
 0x1ab   : > { %938 = vmatmul.mubr.f32.vlgmr.msra.gmra.mrb[16].mxu0 %v1810_v7  ;;  %v1269_v7 = vld [vmem:[%s2365_s1 + $0x470] sm:$0xff] }
 0x1ac   : > { %1756 = vmatpush3.bf16.msra.mxu1 %v1753_v2  ;;  %v1773_v8 = vpack.c.bf16 %v1270_v4, %v1269_v7 }
 0x1ad   : > { %1758 = vmatprep.subr.bf16.mxu1 %v1757_v12 }
 0x1b0   : > { %1760 = vmatpush3.bf16.msra.mxu1 %v1757_v12 }
 0x1b1   : > { %1762 = vmatprep.subr.bf16.mxu1 %v1761_v50 }
 0x1b4   : > { %1764 = vmatpush3.bf16.msra.mxu1 %v1761_v50 }
 0x1b5   : > { %1766 = vmatprep.subr.bf16.mxu1 %v1765_v56 }
 0x1b8   : > { %1768 = vmatpush3.bf16.msra.mxu1 %v1765_v56 }
 0x1b9   : > { %1770 = vmatprep.subr.bf16.mxu1 %v1769_v63 }
 0x1bc   : > { %1772 = vmatpush3.bf16.msra.mxu1 %v1769_v63 }
 0x1bd   : > { %1774 = vmatprep.subr.bf16.mxu1 %v1773_v8 }
 0x1c0   : > { %1776 = vmatpush3.bf16.msra.mxu1 %v1773_v8 }
 0x270   : > { %v1378_v24 = vpop.f32.mrb[10].mxu0 }
 0x271   : > { %v1379_v25 = vpop.f32.mrb[11].mxu0 }
 0x272   : > { %v1380_v27 = vadd.f32 %v1379_v25, %v1378_v24 }
 0x274   : > { %v1381_v28 = vpop.f32.mrb[12].mxu0  ;;  %v648_v29 = vadd.f32 %v1380_v27, %v1220_v26 }
 0x275   : > { %v1382_v30 = vpop.f32.mrb[13].mxu0 }
 0x276   : > { %v1383_v31 = vadd.f32 %v1382_v30, %v1381_v28  ;;  %v1543_v32 = vpop.f32.mrb[4].mxu1 }
 0x277   : > { %v731_v33 = vadd.f32 %v1543_v32, %v648_v29  ;;  %v726_v34 = vpop.f32.mrb[5].mxu1 }
 0x278   : > { %v653_v38 = vadd.f32 %v1383_v31, %v1220_v26  ;;  %v1801_v31 = vld [vmem:[#allocation2 + $0x8] sm:$0xff] }
 0x279   : > { %v745_v35 = vmin.f32 %v731_v33, 0.0  ;;  %v743_v59 = vmax.f32 %v731_v33, 0.0 }
 0x27a   : > { %v1384_v36 = vpop.f32.mrb[14].mxu0  ;;  %v1546_v37 = vpop.f32.mrb[6].mxu1 }
 0x27b   : > { %v747_v39 = vmul.f32 1.442695, %v745_v35  ;;  %v1385_v52 = vpop.f32.mrb[15].mxu0  ;;  %v735_v57 = vpop.f32.mrb[7].mxu1 }
 0x27c   : > { %v736_v40 = vadd.f32 %v735_v57, %v653_v38 }
 0x27d   : > { %1793 = vpow2.f32 %v747_v39  ;;  %v1272_v39 = vld [vmem:[%s2366_s2 + $0x2] ss:$0 sm:$0xff] }
 0x27e   : > { %v746_v41 = vmin.f32 %v736_v40, 0.0  ;;  %v744_v5 = vmax.f32 %v736_v40, 0.0  ;;  %v1439_v34 = vpop.f32.mrb[16].mxu0 }
 0x27f   : > { %v1440_v35 = vpop.f32.mrb[17].mxu0 }
 0x280   : > { %v749_v42 = vmul.f32 1.442695, %v746_v41 }
 0x282   : > { %1795 = vpow2.f32 %v749_v42 }
 0x287   : > { %v1794_v55 = vpop.eup %1793 }
 0x288   : > { %v1221_v58 = vadd.f32 -1.0, %v1794_v55 }
 0x28a   : > { %v753_v60 = vmul.f32 1.6732632, %v1221_v58 }
 0x28c   : > { %v1796_v0 = vpop.eup %1795  ;;  %v755_v1 = vadd.f32 %v753_v60, %v743_v59 }
 0x28d   : > { %v1222_v2 = vadd.f32 -1.0, %v1796_v0 }
 0x28e   : > { %v757_v3 = vmul.f32 1.050701, %v755_v1 }
 0x28f   : > { %v754_v6 = vmul.f32 1.6732632, %v1222_v2 }
 0x290   : > { %779 = vrot.lane.b32.xlu0 %v757_v3, %s1812_s22  ;;  %v761_v9 = vrot.slane %v757_v3, 7  ;;  %v787_v12 = vrot.slane %v757_v3, 1 }
 0x291   : > { %v756_v10 = vadd.f32 %v754_v6, %v744_v5 }
 0x292   : > { %764 = vrot.lane.b32.xlu1 %v761_v9, %s1812_s22 }
 0x293   : > { %v758_v11 = vmul.f32 1.050701, %v756_v10 }
 0x295   : > { %781 = vrot.lane.b32.xlu0 %v758_v11, %s1812_s22  ;;  %v762_v13 = vrot.slane %v758_v11, 7  ;;  %v788_v14 = vrot.slane %v758_v11, 1 }
 0x296   : > { %790 = vrot.lane.b32.xlu1 %v787_v12, %s1812_s22 }
 0x297   : > { %v763_v15 = vsel %vm187_vm3, %v761_v9, %v762_v13  ;;  %v789_v16 = vsel %vm202_vm4, %v787_v12, %v788_v14 }
 0x299   : > { %766 = vrot.lane.b32.xlu0 %v763_v15, %s1812_s22 }
 0x29a   : > { %792 = vrot.lane.b32.xlu1 %v789_v16, %s1812_s22 }
 0x29d   : > { %794 = vrot.lane.b32.xlu0 %v788_v14, %s1812_s22 }
 0x29e   : > { %768 = vrot.lane.b32.xlu1 %v762_v13, %s1812_s22 }
 0x302   : > { %v780_v17 = vpop.permute.xlu0 %779 }
 0x303   : > { %785 = vst.msk [vmem:[#allocation2 + $0x20] sm:$0xff] %vm775_vm12, %v780_v17 }
 0x304   : > { %v765_v18 = vpop.permute.xlu1 %764 }
 0x305   : > { %774 = vst.msk [vmem:[#allocation2 + $0x18] sm:$0xfe] %vm773_vm13, %v765_v18 }
 0x307   : > { %v782_v19 = vpop.permute.xlu0 %781 }
 0x308   : > { %786 = vst.msk [vmem:[#allocation2 + $0x38] sm:$0xff] %vm775_vm12, %v782_v19  ;;  %v791_v20 = vpop.permute.xlu1 %790 }
 0x309   : > { %800 = vst.msk [vmem:[#allocation2 + $0x10] sm:$0x80] %vm799_vm14, %v791_v20 }
 0x30a   : > { %v808_v21 = vld [vmem:[#allocation2 + $0x20] sm:$0xff] }
 0x30b   : > { %941 = vmatprep.mubr.f32.mxu0 %v808_v21  ;;  %v767_v22 = vpop.permute.xlu0 %766 }
 0x30c   : > { %776 = vst.msk [vmem:[#allocation2 + $0x30] sm:$0xff] %vm775_vm12, %v767_v22  ;;  %v793_v23 = vpop.permute.xlu1 %792  ;;  %v807_v24 = vld [vmem:[#allocation2 + $0x18] sm:$0xff] }
 0x30d   : > { %801 = vst.msk [vmem:[#allocation2 + $0x28] sm:$0xff] %vm775_vm12, %v793_v23  ;;  %942 = vmatmul.mubr.f32.gmra.mrb[18].mxu0 %v807_v24 }
 0x30f   : > { %v795_v25 = vpop.permute.xlu0 %794  ;;  %v811_v26 = vld [vmem:[#allocation2 + $0x38] sm:$0xff] }
 0x310   : > { %803 = vst.msk [vmem:[#allocation2 + $0x40] sm:$0x7f] %vm802_vm15, %v795_v25  ;;  %v769_v27 = vpop.permute.xlu1 %768  ;;  %946 = vmatprep.mubr.f32.mxu0 %v811_v26  ;;  %v806_v28 = vld [vmem:[#allocation2 + $0x10] sm:$0xff] }
 0x311   : > { %778 = vst.msk [vmem:[#allocation2 + $0x48] sm:$0x1] %vm777_vm0, %v769_v27  ;;  %1579 = vmatprep.mubr.f32.mxu1 %v806_v28 }
 0x313   : > { %v810_v29 = vld [vmem:[#allocation2 + $0x30] sm:$0xff] }
 0x314   : > { %947 = vmatmul.mubr.f32.gmra.mrb[20].mxu0 %v810_v29  ;;  %v809_v30 = vld [vmem:[#allocation2 + $0x28] sm:$0xff] }
 0x315   : > { %1580 = vmatmul.mubr.f32.vlgmr.msra.gmra.mrb[8].mxu1 %v809_v30  ;;  %951 = vmatprep.mubr.f32.mxu0 %v1801_v31 }
 0x317   : > { %v812_v32 = vld [vmem:[#allocation2 + $0x40] sm:$0xff] }
 0x318   : > { %1582 = vmatprep.mubr.f32.mxu1 %v812_v32  ;;  %v813_v33 = vld [vmem:[#allocation2 + $0x48] sm:$0xff] }
 0x319   : > { %952 = vmatmul.mubr.f32.gmra.mrb[22].mxu0 %v813_v33  ;;  %1583 = vmatmul.mubr.f32.gmra.mrb[10].mxu1 %v1801_v31 }
 0x3e0   : > { %v1442_v36 = vpop.f32.mrb[18].mxu0 }
 0x3e1   : > { %v1443_v37 = vpop.f32.mrb[19].mxu0 }
 0x3e2   : > { %v1444_v38 = vadd.f32 %v1443_v37, %v1442_v36 }
 0x3e4   : > { %v944_v57 = vadd.f32 %v1444_v38, %v1272_v39 }
 0x3e7   : > { %v1445_v52 = vpop.f32.mrb[20].mxu0 }
 0x3e8   : > { %v1446_v40 = vpop.f32.mrb[21].mxu0  ;;  %v1581_v41 = vpop.f32.mrb[8].mxu1 }
 0x3e9   : > { %v1447_v42 = vadd.f32 %v1446_v40, %v1445_v52  ;;  %v1027_v43 = vadd.f32 %v1581_v41, %v944_v57  ;;  %v1022_v44 = vpop.f32.mrb[9].mxu1 }
 0x3eb   : > { %v1041_v45 = vmin.f32 %v1027_v43, 0.0  ;;  %v949_v46 = vadd.f32 %v1447_v42, %v1272_v39  ;;  %v1039_v59 = vmax.f32 %v1027_v43, 0.0 }
 0x3ec   : > { %v1448_v47 = vpop.f32.mrb[22].mxu0  ;;  %v1584_v48 = vpop.f32.mrb[10].mxu1 }
 0x3ed   : > { %v1043_v49 = vmul.f32 1.442695, %v1041_v45  ;;  %v1449_v50 = vpop.f32.mrb[23].mxu0  ;;  %v1031_v51 = vpop.f32.mrb[11].mxu1 }
 0x3ee   : > { %v1032_v53 = vadd.f32 %v1031_v51, %v949_v46 }
 0x3ef   : > { %1797 = vpow2.f32 %v1043_v49 }
 0x3f0   : > { %v1042_v54 = vmin.f32 %v1032_v53, 0.0  ;;  %v1040_v1 = vmax.f32 %v1032_v53, 0.0 }
 0x3f2   : > { %v1045_v55 = vmul.f32 1.442695, %v1042_v54 }
 0x3f4   : > { %1799 = vpow2.f32 %v1045_v55 }
 0x3f9   : > { %v1798_v56 = vpop.eup %1797 }
 0x3fa   : > { %v1273_v58 = vadd.f32 -1.0, %v1798_v56 }
 0x3fc   : > { %v1049_v60 = vmul.f32 1.6732632, %v1273_v58 }
 0x3fe   : > { %v1800_v61 = vpop.eup %1799  ;;  %v1051_v62 = vadd.f32 %v1049_v60, %v1039_v59 }
 0x3ff   : > { %v1274_v63 = vadd.f32 -1.0, %v1800_v61 }
 0x400   : > { %v1053_v0 = vmul.f32 1.050701, %v1051_v62 }
 0x401   : > { %v1050_v2 = vmul.f32 1.6732632, %v1274_v63 }
 0x402   : > { %1075 = vrot.lane.b32.xlu0 %v1053_v0, %s1813_s25  ;;  %v1083_v3 = vrot.slane %v1053_v0, 1  ;;  %v1057_v4 = vrot.slane %v1053_v0, 7 }
 0x403   : > { %v1052_v7 = vadd.f32 %v1050_v2, %v1040_v1 }
 0x404   : > { %1086 = vrot.lane.b32.xlu1 %v1083_v3, %s1813_s25 }
 0x405   : > { %v1054_v5 = vmul.f32 1.050701, %v1052_v7 }
 0x406   : > { %1060 = vrot.lane.b32.xlu0 %v1057_v4, %s1813_s25 }
 0x407   : > { %v1058_v6 = vrot.slane %v1054_v5, 7  ;;  %v1084_v8 = vrot.slane %v1054_v5, 1 }
 0x408   : > { %1077 = vrot.lane.b32.xlu1 %v1054_v5, %s1813_s25 }
 0x409   : > { %v1059_v9 = vsel %vm187_vm3, %v1057_v4, %v1058_v6  ;;  %v1085_v10 = vsel %vm202_vm4, %v1083_v3, %v1084_v8  ;;  %vm1073_vm3 = vcmask 122976   ;;  %vm1098_vm4 = vcmask 129120  }
 0x40a   : > { %1064 = vrot.lane.b32.xlu0 %v1058_v6, %s1813_s25 }
 0x40c   : > { %1062 = vrot.lane.b32.xlu1 %v1059_v9, %s1813_s25 }
 0x40e   : > { %1088 = vrot.lane.b32.xlu0 %v1085_v10, %s1813_s25 }
 0x410   : > { %1090 = vrot.lane.b32.xlu1 %v1084_v8, %s1813_s25 }
 0x474   : > { %v1076_v11 = vpop.permute.xlu0 %1075 }
 0x475   : > { %1081 = vst.msk [vmem:[#allocation2 + $0x20] sm:$0xff] %vm1071_vm1, %v1076_v11 }
 0x476   : > { %v1087_v12 = vpop.permute.xlu1 %1086 }
 0x477   : > { %1096 = vst.msk [vmem:[#allocation2 + $0x10] sm:$0x80] %vm1095_vm2, %v1087_v12 }
 0x478   : > { %v1061_v13 = vpop.permute.xlu0 %1060 }
 0x479   : > { %1070 = vst.msk [vmem:[#allocation2 + $0x18] sm:$0xfe] %vm1069_vm5, %v1061_v13 }
 0x47a   : > { %v1078_v14 = vpop.permute.xlu1 %1077 }
 0x47b   : > { %1082 = vst.msk [vmem:[#allocation2 + $0x38] sm:$0xff] %vm1071_vm1, %v1078_v14 }
 0x47c   : > { %v1100_v15 = vld [vmem:[#allocation2 + $0x20] sm:$0xff]  ;;  %v1065_v16 = vpop.permute.xlu0 %1064 }
 0x47d   : > { %1102 = vst [vmem:[%s170_s29] sm:$0xff] %v1100_v15  ;;  %1074 = vst.msk [vmem:[#allocation2 + $0x48] sm:$0x1] %vm1073_vm3, %v1065_v16 }
 0x47e   : > { %v1063_v17 = vpop.permute.xlu1 %1062 }
 0x47f   : > { %1072 = vst.msk [vmem:[#allocation2 + $0x30] sm:$0xff] %vm1071_vm1, %v1063_v17 }
 0x480   : > { %v1089_v18 = vpop.permute.xlu0 %1088 }
 0x481   : > { %1097 = vst.msk [vmem:[#allocation2 + $0x28] sm:$0xff] %vm1071_vm1, %v1089_v18 }
 0x482   : > { %v1101_v19 = vld [vmem:[#allocation2 + $0x38] sm:$0xff]  ;;  %v1091_v20 = vpop.permute.xlu1 %1090 }
 0x483   : > { %1103 = vst [vmem:[%s170_s29 + $0x8] sm:$0xff] %v1101_v19  ;;  %1099 = vst.msk [vmem:[#allocation2 + $0x40] sm:$0x7f] %vm1098_vm4, %v1091_v20 }
 0x484 PF: > { %s13_s12 = sadd.s32 1, %s1808_s12  }
 0x485   : > { %p10_p4 = scmp.ge.s32.totalorder %s13_s12, 4  }
 0x487   :  { %12 = sbr.rel (!%p10_p4) target bundleno = 1 (0x1), region = 66 }

</bundles_post_ra>
